<compile_context>
chip_gen: v7x
topology: tpu7x:2x2x1
jax: 0.10.0
libtpu: 0.0.40
codegen_flags: <defaults>
</compile_context>

<pallas_src>
import jax
import jax.numpy as jnp
from jax.experimental import pallas as pl
from jax.experimental.pallas import tpu as pltpu


def _round_up(x, m):
    return ((x + m - 1) // m) * m


def fusion_conv_kernel(p_ref, i_ref, wp_ref, wi_ref, bias_ref, o_ref):
    """One grid step = one (batch, N-tile) block.

    p_ref    : (1, Cp, TN)  point-feature tile
    i_ref    : (1, Ci, TN)  image-feature tile
    wp_ref   : (O, Cp)      BN-scale-folded conv weight, point-channel slice
    wi_ref   : (O, Ci)      BN-scale-folded conv weight, img-channel slice
    bias_ref : (O, 1)       folded bias  (scale*(conv_b - mean) + beta), f32
    o_ref    : (1, O, TN)   output tile
    """
    p = p_ref[0]     # (Cp, TN)
    im = i_ref[0]    # (Ci, TN)
    # Conv1d(kernel=1) over concatenated channels == Wp @ p + Wi @ im   (MXU)
    acc = jnp.dot(wp_ref[...], p, preferred_element_type=jnp.float32)
    acc = acc + jnp.dot(wi_ref[...], im, preferred_element_type=jnp.float32)
    # Folded BN bias + ReLU (VPU elementwise); cast only at the store.
    y = acc + bias_ref[...]
    o_ref[0] = jnp.maximum(y, 0.0).astype(o_ref.dtype)


def fusion_conv(point_features, img_features, params, *, eps=1e-5, tn=2048):
    """Pallas wrapper.

    point_features : (B, Cp, N)   img_features : (B, Ci, N)
    params: {"w": (O, Cp+Ci), "b": (O,), "gamma", "beta",
             "running_mean", "running_var": (O,)}
    Returns (B, O, N).
    """
    B, Cp, N = point_features.shape
    _, Ci, _ = img_features.shape
    w, b_conv, gamma, beta, run_mean, run_var = (
        params["w"], params["b"], params["gamma"], params["beta"],
        params["running_mean"], params["running_var"],
    )
    O = w.shape[0]
    dtype = point_features.dtype
    itemsize = jnp.dtype(dtype).itemsize

    # ---- Fold eval-mode BN into the conv weights / bias (one-time, plain JAX,
    #      done in f32 regardless of activation dtype).
    scale = (gamma / jnp.sqrt(run_var + eps)).astype(jnp.float32)       # (O,)
    bias = scale * (b_conv.astype(jnp.float32)
                    - run_mean.astype(jnp.float32)) + beta.astype(jnp.float32)
    w32 = w.astype(jnp.float32)
    wp = (scale[:, None] * w32[:, :Cp]).astype(dtype)                   # (O, Cp)
    wi = (scale[:, None] * w32[:, Cp:Cp + Ci]).astype(dtype)            # (O, Ci)
    bias2d = bias.reshape(O, 1)                                         # (O, 1) f32

    # ---- Tile N (lane axis) into large lane-dense blocks; pad so no masking.
    TN = min(_round_up(tn, 128), _round_up(N, 128))
    N_pad = _round_up(N, TN)
    if N_pad != N:
        pad = ((0, 0), (0, 0), (0, N_pad - N))
        point_features = jnp.pad(point_features, pad)
        img_features = jnp.pad(img_features, pad)
    n_tiles = N_pad // TN

    # ---- Explicit VMEM budget: double-buffered in/out tiles + resident consts.
    cp_pad = _round_up(max(Cp, 1), 8)
    ci_pad = _round_up(max(Ci, 1), 8)
    o_pad = _round_up(max(O, 1), 8)
    tile_bytes = (cp_pad + ci_pad + o_pad) * TN * itemsize
    const_bytes = o_pad * (_round_up(Cp, 128) + _round_up(Ci, 128)) * itemsize \
        + o_pad * 128 * 4
    vmem_limit = min(max(4 * tile_bytes + 2 * const_bytes + (1 << 20), 8 << 20),
                     48 << 20)  # stay well under v7x's 64 MiB physical VMEM

    out = pl.pallas_call(
        fusion_conv_kernel,
        out_shape=jax.ShapeDtypeStruct((B, O, N_pad), dtype),
        grid_spec=pltpu.PrefetchScalarGridSpec(
            num_scalar_prefetch=0,
            grid=(B, n_tiles),
            in_specs=[
                pl.BlockSpec((1, Cp, TN), lambda b, n: (b, 0, n)),
                pl.BlockSpec((1, Ci, TN), lambda b, n: (b, 0, n)),
                pl.BlockSpec((O, Cp), lambda b, n: (0, 0)),
                pl.BlockSpec((O, Ci), lambda b, n: (0, 0)),
                pl.BlockSpec((O, 1), lambda b, n: (0, 0)),
            ],
            out_specs=pl.BlockSpec((1, O, TN), lambda b, n: (b, 0, n)),
        ),
        compiler_params=pltpu.CompilerParams(
            dimension_semantics=("parallel", "parallel"),
            vmem_limit_bytes=int(vmem_limit),
        ),
    )(point_features, img_features, wp, wi, bias2d)

    if N_pad != N:
        out = out[:, :, :N]
    return out


def fusion_conv_ref(point_features, img_features, params, *, eps=1e-5):
    """Pure-JAX reference of the PyTorch forward (BN in eval mode)."""
    x = jnp.concatenate([point_features, img_features], axis=1)   # (B, Cin, N)
    w, b = params["w"], params["b"]
    y = jnp.einsum("oc,bcn->bon", w, x) + b[None, :, None]
    y = (y - params["running_mean"][None, :, None]) / jnp.sqrt(
        params["running_var"][None, :, None] + eps)
    y = y * params["gamma"][None, :, None] + params["beta"][None, :, None]
    return jnp.maximum(y, 0.0)


if __name__ == "__main__":
    # Small shapes consistent with the module: B=2, Cp=Ci=4 (inplanes=8),
    # outplanes=16.  N=200 (not a multiple of 128) exercises the pad/slice
    # path so the ragged-N handling is validated too.
    B, Cp, Ci, O, N = 2, 4, 4, 16, 200
    Cin = Cp + Ci

    key = jax.random.PRNGKey(0)
    k1, k2, k3, k4, k5, k6, k7, k8 = jax.random.split(key, 8)

    point_features = jax.random.normal(k1, (B, Cp, N), dtype=jnp.float32)
    img_features = jax.random.normal(k2, (B, Ci, N), dtype=jnp.float32)

    # Deterministic synthetic parameters (Conv1d(Cin, O, 1) + BatchNorm1d(O)).
    params = {
        "w": jax.random.normal(k3, (O, Cin), dtype=jnp.float32) * 0.1,
        "b": jax.random.normal(k4, (O,), dtype=jnp.float32) * 0.1,
        "gamma": 1.0 + 0.1 * jax.random.normal(k5, (O,), dtype=jnp.float32),
        "beta": 0.1 * jax.random.normal(k6, (O,), dtype=jnp.float32),
        "running_mean": 0.1 * jax.random.normal(k7, (O,), dtype=jnp.float32),
        "running_var": jnp.abs(1.0 + 0.1 * jax.random.normal(k8, (O,), dtype=jnp.float32)),
    }
    # TODO(synk): training-mode BatchNorm (batch statistics + running-stat
    # update) not implemented; eval-mode BN is folded into the conv weights.

    out = fusion_conv(point_features, img_features, params)
    out = jax.block_until_ready(out)

    ref = fusion_conv_ref(point_features, img_features, params)
    assert out.shape == (B, O, N)
    assert jnp.allclose(out, ref, atol=1e-4, rtol=1e-4), "mismatch vs reference"

    print("KERNEL_OK")
</pallas_src>

<mosaic_0001>
module attributes {stable_mosaic.version = 11 : i64} {
  func.func @fusion_conv_kernel(%arg0: i32, %arg1: i32, %arg2: memref<1x4x256xf32, #tpu.memory_space<vmem>>, %arg3: memref<1x4x256xf32, #tpu.memory_space<vmem>>, %arg4: memref<16x4xf32, #tpu.memory_space<vmem>>, %arg5: memref<16x4xf32, #tpu.memory_space<vmem>>, %arg6: memref<16x1xf32, #tpu.memory_space<vmem>>, %arg7: memref<1x16x256xf32, #tpu.memory_space<vmem>>) attributes {dimension_semantics = [#tpu.dimension_semantics<parallel>, #tpu.dimension_semantics<parallel>], iteration_bounds = array<i64: 2, 1>, scalar_prefetch = 0 : i64, scratch_operands = 0 : i64, tpu.core_type = #tpu.core_type<tc>, window_params = [{transform_indices = @transform_0, window_bounds = array<i64: 1, 4, 256>}, {transform_indices = @transform_1, window_bounds = array<i64: 1, 4, 256>}, {pipeline_mode = #tpu.pipeline_mode<synchronous>, transform_indices = @transform_2, window_bounds = array<i64: 16, 4>}, {pipeline_mode = #tpu.pipeline_mode<synchronous>, transform_indices = @transform_3, window_bounds = array<i64: 16, 4>}, {pipeline_mode = #tpu.pipeline_mode<synchronous>, transform_indices = @transform_4, window_bounds = array<i64: 16, 1>}, {transform_indices = @transform_5, window_bounds = array<i64: 1, 16, 256>}]} {
    %c0 = arith.constant 0 : index
    %c0_0 = arith.constant 0 : index
    %c0_1 = arith.constant 0 : index
    %0 = vector.load %arg2[%c0, %c0_0, %c0_1] : memref<1x4x256xf32, #tpu.memory_space<vmem>>, vector<1x4x256xf32>
    %1 = vector.shape_cast %0 : vector<1x4x256xf32> to vector<4x256xf32>
    %c0_2 = arith.constant 0 : index
    %c0_3 = arith.constant 0 : index
    %c0_4 = arith.constant 0 : index
    %2 = vector.load %arg3[%c0_2, %c0_3, %c0_4] : memref<1x4x256xf32, #tpu.memory_space<vmem>>, vector<1x4x256xf32>
    %3 = vector.shape_cast %2 : vector<1x4x256xf32> to vector<4x256xf32>
    %c0_5 = arith.constant 0 : index
    %c0_6 = arith.constant 0 : index
    %4 = vector.load %arg4[%c0_5, %c0_6] : memref<16x4xf32, #tpu.memory_space<vmem>>, vector<16x4xf32>
    %cst = arith.constant dense<0.000000e+00> : vector<16x256xf32>
    %5 = tpu.matmul %4, %1, %cst {dimension_numbers = #tpu.dot_dimension_numbers<[1], [0], [0], [1], [0, 0, 1, 1], [], []>} : vector<16x4xf32>, vector<4x256xf32>, vector<16x256xf32> -> vector<16x256xf32>
    %c0_7 = arith.constant 0 : index
    %c0_8 = arith.constant 0 : index
    %6 = vector.load %arg5[%c0_7, %c0_8] : memref<16x4xf32, #tpu.memory_space<vmem>>, vector<16x4xf32>
    %cst_9 = arith.constant dense<0.000000e+00> : vector<16x256xf32>
    %7 = tpu.matmul %6, %3, %cst_9 {dimension_numbers = #tpu.dot_dimension_numbers<[1], [0], [0], [1], [0, 0, 1, 1], [], []>} : vector<16x4xf32>, vector<4x256xf32>, vector<16x256xf32> -> vector<16x256xf32>
    %8 = arith.addf %5, %7 : vector<16x256xf32>
    %c0_10 = arith.constant 0 : index
    %c0_11 = arith.constant 0 : index
    %9 = vector.load %arg6[%c0_10, %c0_11] : memref<16x1xf32, #tpu.memory_space<vmem>>, vector<16x1xf32>
    %10 = vector.broadcast %9 : vector<16x1xf32> to vector<16x256xf32>
    %11 = arith.addf %8, %10 : vector<16x256xf32>
    %cst_12 = arith.constant 0.000000e+00 : f32
    %12 = vector.broadcast %cst_12 : f32 to vector<16x256xf32>
    %13 = arith.maximumf %11, %12 : vector<16x256xf32>
    %c0_13 = arith.constant 0 : index
    %c0_14 = arith.constant 0 : index
    %c0_15 = arith.constant 0 : index
    %14 = vector.load %arg7[%c0_13, %c0_14, %c0_15] : memref<1x16x256xf32, #tpu.memory_space<vmem>>, vector<1x16x256xf32>
    %15 = vector.shape_cast %14 : vector<1x16x256xf32> to vector<16x256xf32>
    %16 = vector.shape_cast %13 : vector<16x256xf32> to vector<1x16x256xf32>
    tpu.vector_store %arg7[%c0_13, %c0_14, %c0_15], %16 {strides = array<i32>} : memref<1x16x256xf32, #tpu.memory_space<vmem>>, vector<1x16x256xf32>,
    return
  }
  func.func @transform_0(%arg0: i32, %arg1: i32) -> (i32, i32, i32) {
    %c0_i32 = arith.constant 0 : i32
    %c0_i32_0 = arith.constant 0 : i32
    return %arg0, %c0_i32, %arg1 : i32, i32, i32
  }
  func.func @transform_1(%arg0: i32, %arg1: i32) -> (i32, i32, i32) {
    %c0_i32 = arith.constant 0 : i32
    %c0_i32_0 = arith.constant 0 : i32
    return %arg0, %c0_i32, %arg1 : i32, i32, i32
  }
  func.func @transform_2(%arg0: i32, %arg1: i32) -> (i32, i32) {
    %c0_i32 = arith.constant 0 : i32
    %c0_i32_0 = arith.constant 0 : i32
    %c0_i32_1 = arith.constant 0 : i32
    return %c0_i32, %c0_i32_0 : i32, i32
  }
  func.func @transform_3(%arg0: i32, %arg1: i32) -> (i32, i32) {
    %c0_i32 = arith.constant 0 : i32
    %c0_i32_0 = arith.constant 0 : i32
    %c0_i32_1 = arith.constant 0 : i32
    return %c0_i32, %c0_i32_0 : i32, i32
  }
  func.func @transform_4(%arg0: i32, %arg1: i32) -> (i32, i32) {
    %c0_i32 = arith.constant 0 : i32
    %c0_i32_0 = arith.constant 0 : i32
    %c0_i32_1 = arith.constant 0 : i32
    return %c0_i32, %c0_i32_0 : i32, i32
  }
  func.func @transform_5(%arg0: i32, %arg1: i32) -> (i32, i32, i32) {
    %c0_i32 = arith.constant 0 : i32
    %c0_i32_0 = arith.constant 0 : i32
    return %arg0, %c0_i32, %arg1 : i32, i32, i32
  }
}

</mosaic_0001>

<bundles_post_ra>
// kernel: tpu_custom_call.1
= control target key start
LH: loop header
LB: loop body
LE: loop exit
PB: predicated region body
PF: predicated region fallthrough
CT: control target
= control target key end

     0   :  { %10 = vsyncpa [#allocation3], 0  ;;  %s960_s0 = inlined_call_operand.vmem [shape: f32[2,4,256], index: 0, kind: input, shape index: {}]   ;;  %s961_s1 = inlined_call_operand.vmem [shape: f32[2,4,256], index: 1, kind: input, shape index: {}]   ;;  %s962_s2 = inlined_call_operand.vmem [shape: f32[16,4], index: 2, kind: input, shape index: {}]   ;;  %s963_s3 = inlined_call_operand.vmem [shape: f32[16,4], index: 3, kind: input, shape index: {}]   ;;  %s964_s4 = inlined_call_operand.vmem [shape: f32[16,1], index: 4, kind: input, shape index: {}]   ;;  %s965_s5 = inlined_call_operand.hbm [shape: f32[2,16,256], index: 5, kind: output, shape index: {}]  }
   0x1   :  { %12 = vsyncpa [#allocation3 + $0x1], 0  ;;  %s820_s18 = smov 0   ;;  %s822_s19 = smov 0  }
   0x2   :  { %s824_s20 = smov 0   ;;  %s826_s21 = smov 0  }
   0x3   :  { %s828_s22 = smov 0   ;;  %s830_s23 = smov 0  }
   0x4 LB: > { %s613_s24 = sadd.s32 4294967295, %s783_s23   ;;  %s614_s25 = sadd.s32 4294967294, %s783_s23   ;;  %s783_s23 = sphi %s830_s23, %s18_s23   ;;  %s779_s22 = sphi %s828_s22, %s972_s22   ;;  %s775_s21 = sphi %s826_s21, %s971_s21   ;;  %s771_s20 = sphi %s824_s20, %s970_s20   ;;  %s767_s19 = sphi %s822_s19, %s969_s19   ;;  %s763_s18 = sphi %s820_s18, %s968_s18  }
   0x5   : > { %s30_s26 = sadd.s32 1, %s779_s22  ;;  %s158_s27 = sadd.s32 1, %s771_s20 }
   0x6   : > { %p32_p0 = scmp.ge.s32.totalorder %s30_s26, 2  ;;  %p168_p1 = scmp.ne.s32.totalorder %s771_s20, %s767_s19 }
   0x7   : > { %p169_p2 = scmp.eq.s32.totalorder %s613_s24, 1  ;;  %p174_p3 = scmp.ne.s32.totalorder %s767_s19, %s763_s18 }
   0x8   : > { %s974_s26 = smov (%p32_p0, %s30_s26), 0  ;;  %p175_p5 = scmp.eq.s32.totalorder %s614_s25, 1 }
   0x9   : > { %p860_p4 = por %p169_p2, %p168_p1  ;;  %s153_s29 = ssub.s32 %s779_s22, %s974_s26 }
   0xa   : > { %p617_p6 = scmp.ge.s32.totalorder %s783_s23, 1  ;;  %p156_p7 = scmp.eq.s32.totalorder %s153_s29, 0 }
   0xb   : > { %p867_p8 = por %p175_p5, %p174_p3  ;;  %p228_p9 = scmp.lt.s32.totalorder %s783_s23, 3 }
   0xc   : > { %s873_s6 = scalar_select %p156_p7, %s771_s20, %s158_s27  }
   0xd   : > { %p229_p10 = pnand %p617_p6, %p228_p9 }
   0xe   : > { %p270_p11 = scmp.lt.s32.totalorder (!%p229_p10), %s775_s21, 1  ;;  %v785_v0 = vmov (!%p229_p10), 0.0   ;;  %v476_v1 = vld [vmem:[%s964_s4] sm:$0xff] (!%p229_p10)  ;;  %v786_v2 = vmov (!%p229_p10), 0   ;;  %v477_v3 = vld [vmem:[%s964_s4 + $0x8] sm:$0xff] (!%p229_p10)  ;;  %vm305_vm0 = vcmask (!%p229_p10), 1043456  }
   0xf   : > { %232 = sbr.rel (%p229_p10) target bundleno = 270 (0x10e), region = 40  ;;  %374 = vmatprep.mubr.f32.mxu1 (!%p229_p10), %v785_v0  ;;  %463 = vmatprep.mubr.f32.mxu0 (!%p229_p10), %v785_v0  ;;  %v294_v8 = vld [vmem:[%s963_s3] sm:$0xff] (!%p229_p10)  ;;  %vm298_vm1 = vcmask (!%p229_p10), 31744   ;;  %v295_v10 = vld [vmem:[%s963_s3 + $0x8] sm:$0xff] (!%p229_p10)  ;;  %s266_s12 = sand.u32 (!%p229_p10), 1, %s767_s19  }
  0x10   : > { %702 = vset.pattern.permute.xlu0 (!%p229_p10), %v786_v2  ;;  %v292_v9 = vld [vmem:[%s962_s2] sm:$0xff] (!%p229_p10)  ;;  %v293_v11 = vld [vmem:[%s962_s2 + $0x8] sm:$0xff] (!%p229_p10)  ;;  %s618_s13 = sshll.u32 (!%p229_p10), %s266_s12, 5  ;;  %s638_s16 = sshll.u32 (!%p229_p10), %s775_s21, 9 }
  0x11   : > { %480 = vperm.xlu0 (!%p229_p10), %702, %v476_v1   ;;  %s268_s14 = scalar_lea.vmem (!%p229_p10), [#allocation2], %s618_s13  ;;  %s910_s25 = scalar_lea.hbm (!%p229_p10), %s965_s5, %s638_s16 }
  0x12   : > { %s787_s29 = smov (!%p229_p10), [#allocation2]  }
  0x13   : > { %s709_s7 = sshll.u32 (!%p229_p10), %s787_s29, 4  ;;  %s710_s7 = int_to_ptr.vmem [resolvable:$false] %s709_s7 }
  0x14   : > { %s711_s8 = scalar_lea.vmem (!%p229_p10), %s710_s7, 1024 }
  0x15   : > { %485 = vperm.xlu0 (!%p229_p10), %702, %v477_v3  }
  0x16   : > { %s271_s9 = scalar_select %p270_p11, %s775_s21, 1 }
  0x17   : > { %s914_s21 = scalar_lea.sflag [#allocation3], %s266_s12 }
  0x18   : > { %s636_s10 = sshll.u32 %s271_s9, 3 }
  0x19   : > { %s287_s15 = scalar_lea.vmem %s961_s1, %s636_s10  ;;  %s277_s24 = scalar_lea.vmem %s960_s0, %s636_s10 }
  0x1a   : > { %v291_v4 = vld [vmem:[%s287_s15] sm:$0xff]  ;;  %s516_s15 = sshll.u32 %s268_s14, 4  ;;  %s905_s15 = int_to_ptr.vmem [resolvable:$true] %s516_s15 }
  0x1b   : > { %v290_v5 = vld [vmem:[%s277_s24] sm:$0xff]  ;;  %v297_v6 = vcombine.high %v291_v4, %v291_v4  ;;  %s705_s27 = scalar_lea.vmem %s905_s15, 512  ;;  %p712_p1 = scmp.lt.s32.totalorder %s905_s15, %s710_s7 }
  0x1c   : > { %v388_v7 = vcombine.high %v290_v5, %v290_v5  ;;  %p706_p12 = scmp.ne.s32.totalorder %s905_s15, %s705_s27  ;;  %p713_p2 = scmp.lt.s32.totalorder %s711_s8, %s705_s27 }
  0x1d   : > { %623 = vmatprep.subr.msk.mxu1 %vm305_vm0, %v297_v6 }
  0x1e   : > { %627 = vmatprep.subr.msk.mxu0 %vm305_vm0, %v388_v7  ;;  %624 = vmatpush1.msk.msra.mxu1 %vm305_vm0, %v291_v4  ;;  %p707_p13 = pnand %p706_p12, %p860_p4  ;;  %p714_p3 = por %p713_p2, %p712_p1 }
  0x1f   : > { %628 = vmatpush1.msk.msra.mxu0 %vm305_vm0, %v290_v5  ;;  %625 = vmatmul.mubr.msk.f32.vlgmr.msra.gmra.mrb[0].mxu1 %vm298_vm1, %v294_v8 }
  0x20   : > { %629 = vmatmul.mubr.msk.f32.vlgmr.msra.gmra.mrb[0].mxu0 %vm298_vm1, %v292_v9  ;;  %380 = vmatprep.mubr.f32.mxu1 %v785_v0  ;;  %p708_p0 = pneg %p707_p13 }
  0x21   : > { %469 = vmatprep.mubr.f32.mxu0 %v785_v0 }
  0x22   : > { %p715_p5 = pnand %p714_p3, %p708_p0 }
  0x23   : > { %626 = vmatmul.mubr.msk.f32.gmra.mrb[2].mxu1 %vm298_vm1, %v295_v10 }
  0x24   : > { %630 = vmatmul.mubr.msk.f32.gmra.mrb[2].mxu0 %vm298_vm1, %v293_v11 }
  0x90   : > { %v481_v12 = vpop.permute.xlu0 %480 }
  0x94   : > { %v486_v28 = vpop.permute.xlu0 %485 }
  0xf2   : > { %v376_v13 = vpop.f32.mrb[0].mxu1 }
  0xf3   : > { %v465_v14 = vpop.f32.mrb[0].mxu0  ;;  %v378_v16 = vpop.f32.mrb[1].mxu1 }
  0xf4   : > { %v466_v15 = vadd.f32 %v465_v14, %v376_v13  ;;  %v467_v17 = vpop.f32.mrb[1].mxu0 }
  0xf5   : > { %v468_v18 = vadd.f32 %v467_v17, %v378_v16 }
  0xf6   : > { %v488_v19 = vadd.f32 %v481_v12, %v466_v15  ;;  %v382_v21 = vpop.f32.mrb[2].mxu1 }
  0xf7   : > { %v489_v20 = vadd.f32 %v481_v12, %v468_v18  ;;  %v471_v22 = vpop.f32.mrb[2].mxu0  ;;  %v384_v25 = vpop.f32.mrb[3].mxu1 }
  0xf8   : > { %v492_v23 = vmax.f32 %v488_v19, 0.0  ;;  %v472_v24 = vadd.f32 %v471_v22, %v382_v21  ;;  %v473_v26 = vpop.f32.mrb[3].mxu0 }
  0xf9   : > { %v493_v27 = vmax.f32 %v489_v20, 0.0  ;;  %v474_v29 = vadd.f32 %v473_v26, %v384_v25 }
  0xfa   : > { %496 = vst [vmem:[%s268_s14] sm:$0xff] %v492_v23  ;;  %v490_v30 = vadd.f32 %v486_v28, %v472_v24 }
  0xfb   : > { %497 = vst [vmem:[%s268_s14 + $0x8] sm:$0xff] %v493_v27  ;;  %v491_v31 = vadd.f32 %v486_v28, %v474_v29 }
  0xfc   : > { %v494_v32 = vmax.f32 %v490_v30, 0.0 }
  0xfd   : > { %v495_v33 = vmax.f32 %v491_v31, 0.0 }
  0xfe   : > { %498 = vst [vmem:[%s268_s14 + $0x10] sm:$0xff] %v494_v32 }
  0xff   : > { %499 = vst [vmem:[%s268_s14 + $0x18] sm:$0xff] %v495_v33 }
 0x100   : > { %718 = shalt.err (!%p715_p5)
}
 0x101   : > { %s719_s9 = scalar_lea.hbm %s910_s25, 512  ;;  %s723_s12 = scalar_lea.hbm %s965_s5, 1024 }
 0x102   : > { %p720_p6 = scmp.ne.s32.totalorder %s910_s25, %s719_s9  ;;  %p724_p10 = scmp.lt.u32.totalorder %s910_s25, %s965_s5 }
 0x103   : > { %p725_p11 = scmp.lt.u32.totalorder %s723_s12, %s719_s9  ;;  %p727_p13 = scmp.lt.u32.totalorder %s719_s9, %s910_s25 }
 0x104   : > { %p721_p7 = pnand %p720_p6, %p860_p4 }
 0x105   : > { %p726_p12 = por %p725_p11, %p724_p10 }
 0x106   : > { %p722_p9 = pneg %p721_p7 }
 0x107   : > { %p728_p0 = por %p727_p13, %p726_p12 }
 0x109   : > { %p729_p1 = pnand %p728_p0, %p722_p9 }
 0x10b   : > { %732 = shalt.err (!%p729_p1)
}
 0x10c   : > { %s788_s16 = smov 256   ;;  %s789_s17 = smov 16  }
 0x10d   : > { %643 = dma.vmem_to_hbm [thread:$0]  (%p860_p4), %s905_s15, 512, %s910_s25, %s914_s21, %s788_s16, %s788_s16, %s789_s17  }
 0x10e PF: > { %p649_p2 = scmp.ge.s32.totalorder %s783_s23, 2  ;;  %s531_s24 = sand.u32 1, %s763_s18  }
 0x10f   : > { %s532_s27 = scalar_lea.sflag [#allocation3], %s531_s24 }
 0x110   : > { %p646_p3 = pnand %p649_p2, %p867_p8 }
 0x112   : > { %758 = dma.done.wait (!%p646_p3), %s532_s27, 512  }
 0x113   : > { %760 = vsyncadd (!%p646_p3), %s532_s27, 4294966784  ;;  %s18_s23 = sadd.s32 1, %s783_s23   ;;  %s968_s18 = smov %s767_s19 }
 0x114   : > { %p15_p5 = scmp.ge.s32.totalorder %s18_s23, 4   ;;  %s969_s19 = smov %s771_s20 }
 0x115   : > { %s970_s20 = smov %s873_s6  ;;  %s971_s21 = smov %s779_s22 }
 0x116   : > { %s972_s22 = smov %s974_s26  ;;  %17 = sbr.rel (!%p15_p5) target bundleno = 4 (0x4), region = 78 }
 0x11d   :  { %537 = vsyncpa [#allocation3], 1 }
 0x11e   :  { %539 = vsyncpa [#allocation3 + $0x1], 1 }

</bundles_post_ra>
